<compile_context>
chip_gen: v7x
topology: tpu7x:2x2x1
jax: 0.10.0
libtpu: 0.0.40
codegen_flags: <defaults>
</compile_context>

<pallas_src>
import math

import jax
import jax.numpy as jnp
from jax.experimental import pallas as pl
from jax.experimental.pallas import tpu as pltpu


def ffn_kernel(x_ref, w1_ref, b1_ref, w2_ref, b2_ref, w3_ref, b3_ref, o_ref):
    x = x_ref[...]

    # fc1 + (eval-mode dropout = identity) + ReLU   (MXU, f32 accumulation)
    h1 = jnp.dot(x, w1_ref[...], preferred_element_type=jnp.float32) + b1_ref[...]
    h1 = jnp.maximum(h1, 0.0)

    # fc2 + (eval-mode dropout = identity) + ReLU   (MXU, f32 accumulation)
    h2 = jnp.dot(h1, w2_ref[...], preferred_element_type=jnp.float32) + b2_ref[...]
    h2 = jnp.maximum(h2, 0.0)

    # fc3 (output width 1): VPU multiply by the (1, H2) weight row + XLU lane
    # reduction instead of a badly-shaped N=1 MXU matmul. b3 is a scalar in SMEM.
    logits = jnp.sum(h2 * w3_ref[...], axis=-1, keepdims=True) + b3_ref[0, 0]  # (tb, 1)

    # Compact store: write the true (tb, 1) result.  The HBM block is a contiguous
    # tb*4-byte chunk of the (B, 1) output, so writeback is 4 B/row instead of the
    # previous 512 B/row lane-padded slab.
    o_ref[...] = jax.nn.sigmoid(logits).astype(o_ref.dtype)


def feed_forward(x, params, *, tb=None, vmem_limit_bytes=32 * 1024 * 1024):
    """x: [B, D] float32. params: dict of w1,b1,w2,b2,w3,b3. Returns [B, 1]."""
    B, D = x.shape
    H1 = params["w1"].shape[1]
    H2 = params["w2"].shape[1]

    if tb is None:
        # Small batch: one grid step (no pipeline / per-step overhead at all).
        # Large batch: 2048-row tiles amortize the ~0.35 us per-step overhead
        # while staying far under the scoped-VMEM defaults on v5e/v6e/v7x.
        tb = B if B <= 2048 else 2048
    tb = min(tb, B)
    if tb < B:
        tb = ((tb + 7) // 8) * 8          # tiled path: keep tiles sublane-aligned
    Bp = pl.cdiv(B, tb) * tb              # ragged tail -> zero-pad, slice afterwards
    xp = x if Bp == B else jnp.pad(x, ((0, Bp - B), (0, 0)))

    # fc3 weight as a (1, H2) row for the VPU/XLU reduction; b3 as an SMEM scalar.
    w3_row = params["w3"].reshape(1, H2)
    b3 = params["b3"].reshape(1, 1)

    grid = (Bp // tb,)
    # Weight/bias blocks use constant index_maps (resident in VMEM across the grid);
    # at 32/64/32 that is ~24 KB, irrelevant for VMEM budgeting.
    out = pl.pallas_call(
        ffn_kernel,
        out_shape=jax.ShapeDtypeStruct((Bp, 1), jnp.float32),
        grid_spec=pltpu.PrefetchScalarGridSpec(
            num_scalar_prefetch=0,
            grid=grid,
            in_specs=[
                pl.BlockSpec((tb, D), lambda i: (i, 0)),    # x tile
                pl.BlockSpec((D, H1), lambda i: (0, 0)),    # w1 (resident)
                pl.BlockSpec((1, H1), lambda i: (0, 0)),    # b1
                pl.BlockSpec((H1, H2), lambda i: (0, 0)),   # w2 (resident)
                pl.BlockSpec((1, H2), lambda i: (0, 0)),    # b2
                pl.BlockSpec((1, H2), lambda i: (0, 0)),    # w3 as a row
                pl.BlockSpec(memory_space=pltpu.SMEM),      # b3 scalar in SMEM
            ],
            out_specs=pl.BlockSpec((tb, 1), lambda i: (i, 0)),
        ),
        compiler_params=pltpu.CompilerParams(
            dimension_semantics=("parallel",),
            vmem_limit_bytes=vmem_limit_bytes,
        ),
    )(xp, params["w1"], params["b1"], params["w2"], params["b2"], w3_row, b3)

    return out if Bp == B else out[:B]


def init_params(key, input_size, layer1_size, layer2_size):
    """Deterministic init mimicking torch.nn.Linear default (uniform +-1/sqrt(fan_in))."""
    def linear(k, fan_in, fan_out):
        kw, kb = jax.random.split(k)
        bound = 1.0 / math.sqrt(fan_in)
        # stored as [in, out] for direct matmul
        w = jax.random.uniform(kw, (fan_in, fan_out), jnp.float32, -bound, bound)
        b = jax.random.uniform(kb, (1, fan_out), jnp.float32, -bound, bound)
        return w, b

    k1, k2, k3 = jax.random.split(key, 3)
    w1, b1 = linear(k1, input_size, layer1_size)
    w2, b2 = linear(k2, layer1_size, layer2_size)
    w3, b3 = linear(k3, layer2_size, 1)
    return {"w1": w1, "b1": b1, "w2": w2, "b2": b2, "w3": w3, "b3": b3}


if __name__ == "__main__":
    input_size, layer1_size, layer2_size = 32, 64, 32

    key = jax.random.PRNGKey(0)
    kx, kp, kx2 = jax.random.split(key, 3)
    params = init_params(kp, input_size, layer1_size, layer2_size)

    # Pure-JAX reference (same eval-mode dropout semantics).
    def ref_fn(x):
        h1 = jnp.maximum(x @ params["w1"] + params["b1"], 0.0)
        h2 = jnp.maximum(h1 @ params["w2"] + params["b2"], 0.0)
        return jax.nn.sigmoid(h2 @ params["w3"] + params["b3"])

    # 1) Small batch: single-grid-step path.
    B = 16
    x = jax.random.normal(kx, (B, input_size), jnp.float32)
    out = jax.block_until_ready(feed_forward(x, params))
    assert out.shape == (B, 1)
    assert jnp.allclose(out, ref_fn(x), atol=1e-5, rtol=1e-5)

    # 2) Tiled + ragged batch: exercises grid > 1 and the zero-pad tail path.
    B2 = 20
    x2 = jax.random.normal(kx2, (B2, input_size), jnp.float32)
    out2 = jax.block_until_ready(feed_forward(x2, params, tb=8))
    assert out2.shape == (B2, 1)
    assert jnp.allclose(out2, ref_fn(x2), atol=1e-5, rtol=1e-5)

    print("KERNEL_OK")
</pallas_src>

<mosaic_0001>
module attributes {stable_mosaic.version = 11 : i64} {
  func.func @ffn_kernel(%arg0: i32, %arg1: memref<16x32xf32, #tpu.memory_space<vmem>>, %arg2: memref<32x64xf32, #tpu.memory_space<vmem>>, %arg3: memref<1x64xf32, #tpu.memory_space<vmem>>, %arg4: memref<64x32xf32, #tpu.memory_space<vmem>>, %arg5: memref<1x32xf32, #tpu.memory_space<vmem>>, %arg6: memref<1x32xf32, #tpu.memory_space<vmem>>, %arg7: memref<1x1xf32, #tpu.memory_space<smem>>, %arg8: memref<16x1xf32, #tpu.memory_space<vmem>>) attributes {dimension_semantics = [#tpu.dimension_semantics<parallel>], iteration_bounds = array<i64: 1>, scalar_prefetch = 0 : i64, scratch_operands = 0 : i64, tpu.core_type = #tpu.core_type<tc>, window_params = [{transform_indices = @transform_0, window_bounds = array<i64: 16, 32>}, {pipeline_mode = #tpu.pipeline_mode<synchronous>, transform_indices = @transform_1, window_bounds = array<i64: 32, 64>}, {pipeline_mode = #tpu.pipeline_mode<synchronous>, transform_indices = @transform_2, window_bounds = array<i64: 1, 64>}, {pipeline_mode = #tpu.pipeline_mode<synchronous>, transform_indices = @transform_3, window_bounds = array<i64: 64, 32>}, {pipeline_mode = #tpu.pipeline_mode<synchronous>, transform_indices = @transform_4, window_bounds = array<i64: 1, 32>}, {pipeline_mode = #tpu.pipeline_mode<synchronous>, transform_indices = @transform_5, window_bounds = array<i64: 1, 32>}, {transform_indices = @transform_6, window_bounds = array<i64: 1, 1>}, {transform_indices = @transform_7, window_bounds = array<i64: 16, 1>}]} {
    %c0 = arith.constant 0 : index
    %c0_0 = arith.constant 0 : index
    %0 = vector.load %arg1[%c0, %c0_0] : memref<16x32xf32, #tpu.memory_space<vmem>>, vector<16x32xf32>
    %c0_1 = arith.constant 0 : index
    %c0_2 = arith.constant 0 : index
    %1 = vector.load %arg2[%c0_1, %c0_2] : memref<32x64xf32, #tpu.memory_space<vmem>>, vector<32x64xf32>
    %cst = arith.constant dense<0.000000e+00> : vector<16x64xf32>
    %2 = tpu.matmul %0, %1, %cst {dimension_numbers = #tpu.dot_dimension_numbers<[1], [0], [0], [1], [0, 0, 1, 1], [], []>} : vector<16x32xf32>, vector<32x64xf32>, vector<16x64xf32> -> vector<16x64xf32>
    %c0_3 = arith.constant 0 : index
    %c0_4 = arith.constant 0 : index
    %3 = vector.load %arg3[%c0_3, %c0_4] : memref<1x64xf32, #tpu.memory_space<vmem>>, vector<1x64xf32>
    %4 = vector.broadcast %3 : vector<1x64xf32> to vector<16x64xf32>
    %5 = arith.addf %2, %4 : vector<16x64xf32>
    %cst_5 = arith.constant 0.000000e+00 : f32
    %6 = vector.broadcast %cst_5 : f32 to vector<16x64xf32>
    %7 = arith.maximumf %5, %6 : vector<16x64xf32>
    %c0_6 = arith.constant 0 : index
    %c0_7 = arith.constant 0 : index
    %8 = vector.load %arg4[%c0_6, %c0_7] : memref<64x32xf32, #tpu.memory_space<vmem>>, vector<64x32xf32>
    %cst_8 = arith.constant dense<0.000000e+00> : vector<16x32xf32>
    %9 = tpu.matmul %7, %8, %cst_8 {dimension_numbers = #tpu.dot_dimension_numbers<[1], [0], [0], [1], [0, 0, 1, 1], [], []>} : vector<16x64xf32>, vector<64x32xf32>, vector<16x32xf32> -> vector<16x32xf32>
    %c0_9 = arith.constant 0 : index
    %c0_10 = arith.constant 0 : index
    %10 = vector.load %arg5[%c0_9, %c0_10] : memref<1x32xf32, #tpu.memory_space<vmem>>, vector<1x32xf32>
    %11 = vector.broadcast %10 : vector<1x32xf32> to vector<16x32xf32>
    %12 = arith.addf %9, %11 : vector<16x32xf32>
    %cst_11 = arith.constant 0.000000e+00 : f32
    %13 = vector.broadcast %cst_11 : f32 to vector<16x32xf32>
    %14 = arith.maximumf %12, %13 : vector<16x32xf32>
    %c0_12 = arith.constant 0 : index
    %c0_13 = arith.constant 0 : index
    %15 = vector.load %arg6[%c0_12, %c0_13] : memref<1x32xf32, #tpu.memory_space<vmem>>, vector<1x32xf32>
    %16 = vector.broadcast %15 : vector<1x32xf32> to vector<16x32xf32>
    %17 = arith.mulf %14, %16 : vector<16x32xf32>
    %cst_14 = arith.constant dense<0.000000e+00> : vector<16xf32>
    %18 = vector.multi_reduction <add>, %17, %cst_14 [1] : vector<16x32xf32> to vector<16xf32>
    %19 = vector.shape_cast %18 : vector<16xf32> to vector<16x1xf32>
    %c0_15 = arith.constant 0 : index
    %c0_16 = arith.constant 0 : index
    %20 = memref.load %arg7[%c0_15, %c0_16] : memref<1x1xf32, #tpu.memory_space<smem>>
    %21 = vector.broadcast %20 : f32 to vector<16x1xf32>
    %22 = arith.addf %19, %21 : vector<16x1xf32>
    %23 = arith.negf %22 : vector<16x1xf32>
    %24 = math.exp %23 : vector<16x1xf32>
    %cst_17 = arith.constant 1.000000e+00 : f32
    %25 = vector.broadcast %cst_17 : f32 to vector<16x1xf32>
    %26 = arith.addf %25, %24 : vector<16x1xf32>
    %27 = arith.divf %25, %26 : vector<16x1xf32>
    %c0_18 = arith.constant 0 : index
    %c0_19 = arith.constant 0 : index
    %28 = vector.load %arg8[%c0_18, %c0_19] : memref<16x1xf32, #tpu.memory_space<vmem>>, vector<16x1xf32>
    tpu.vector_store %arg8[%c0_18, %c0_19], %27 {strides = array<i32>} : memref<16x1xf32, #tpu.memory_space<vmem>>, vector<16x1xf32>,
    return
  }
  func.func @transform_0(%arg0: i32) -> (i32, i32) {
    %c0_i32 = arith.constant 0 : i32
    %c0_i32_0 = arith.constant 0 : i32
    return %arg0, %c0_i32 : i32, i32
  }
  func.func @transform_1(%arg0: i32) -> (i32, i32) {
    %c0_i32 = arith.constant 0 : i32
    %c0_i32_0 = arith.constant 0 : i32
    %c0_i32_1 = arith.constant 0 : i32
    return %c0_i32, %c0_i32_0 : i32, i32
  }
  func.func @transform_2(%arg0: i32) -> (i32, i32) {
    %c0_i32 = arith.constant 0 : i32
    %c0_i32_0 = arith.constant 0 : i32
    %c0_i32_1 = arith.constant 0 : i32
    return %c0_i32, %c0_i32_0 : i32, i32
  }
  func.func @transform_3(%arg0: i32) -> (i32, i32) {
    %c0_i32 = arith.constant 0 : i32
    %c0_i32_0 = arith.constant 0 : i32
    %c0_i32_1 = arith.constant 0 : i32
    return %c0_i32, %c0_i32_0 : i32, i32
  }
  func.func @transform_4(%arg0: i32) -> (i32, i32) {
    %c0_i32 = arith.constant 0 : i32
    %c0_i32_0 = arith.constant 0 : i32
    %c0_i32_1 = arith.constant 0 : i32
    return %c0_i32, %c0_i32_0 : i32, i32
  }
  func.func @transform_5(%arg0: i32) -> (i32, i32) {
    %c0_i32 = arith.constant 0 : i32
    %c0_i32_0 = arith.constant 0 : i32
    %c0_i32_1 = arith.constant 0 : i32
    return %c0_i32, %c0_i32_0 : i32, i32
  }
  func.func @transform_6(%arg0: i32) -> (i32, i32) {
    %c0_i32 = arith.constant 0 : i32
    %c0_i32_0 = arith.constant 0 : i32
    %c0_i32_1 = arith.constant 0 : i32
    return %c0_i32, %c0_i32_0 : i32, i32
  }
  func.func @transform_7(%arg0: i32) -> (i32, i32) {
    %c0_i32 = arith.constant 0 : i32
    %c0_i32_0 = arith.constant 0 : i32
    return %arg0, %c0_i32 : i32, i32
  }
}

</mosaic_0001>

<bundles_post_ra>
// kernel: tpu_custom_call.1
= control target key start
LH: loop header
LB: loop body
LE: loop exit
PB: predicated region body
PF: predicated region fallthrough
CT: control target
= control target key end

     0   :  { %vm40_vm0 = vcmask 261120   ;;  %vm139_vm1 = vcmask 523264   ;;  %vm254_vm2 = vcmask 7168   ;;  %s452_s1 = inlined_call_operand.vmem [shape: f32[32,64], index: 1, kind: input, shape index: {}]   ;;  %s453_s0 = inlined_call_operand.vmem [shape: f32[16,32], index: 0, kind: input, shape index: {}]   ;;  %s454_s3 = inlined_call_operand.vmem [shape: f32[64,32], index: 3, kind: input, shape index: {}]   ;;  %s455_s2 = inlined_call_operand.vmem [shape: f32[1,64], index: 2, kind: input, shape index: {}]   ;;  %s456_s4 = inlined_call_operand.vmem [shape: f32[1,32], index: 4, kind: input, shape index: {}]   ;;  %s457_s5 = inlined_call_operand.vmem [shape: f32[1,32], index: 5, kind: input, shape index: {}]   ;;  %s458_s6 = inlined_call_operand.<no memory space> [shape: f32[1,1], index: 6, kind: input, shape index: {}]   ;;  %s459_s7 = inlined_call_operand.vmem [shape: f32[16,1], index: 7, kind: output, shape index: {}]  }
   0x1   :  { %v29_v0 = vld [vmem:[%s452_s1] sm:$0xff]  ;;  %v30_v1 = vld [vmem:[%s452_s1 + $0x8] sm:$0xff]  ;;  %v31_v2 = vld [vmem:[%s452_s1 + $0x10] sm:$0xff]  ;;  %v239_v39 = vstv %s458_s6 }
   0x2   :  { %v316_v3 = vpack.c.bf16 %v30_v1, %v29_v0  ;;  %v32_v4 = vld [vmem:[%s452_s1 + $0x18] sm:$0xff]  ;;  %v27_v5 = vld [vmem:[%s453_s0] sm:$0xff]  ;;  %v125_v8 = vld [vmem:[%s454_s3 + $0x8] sm:$0xff] }
   0x3   :  { %v320_v6 = vpack.c.bf16 %v32_v4, %v31_v2  ;;  %294 = vmatprep.mubr.msk.f32.mxu0 %vm40_vm0, %v27_v5  ;;  %v124_v7 = vld [vmem:[%s454_s3] sm:$0xff]  ;;  %v126_v9 = vld [vmem:[%s454_s3 + $0x10] sm:$0xff]  ;;  %v127_v11 = vld [vmem:[%s454_s3 + $0x18] sm:$0xff] }
   0x4   :  { %317 = vmatprep.subr.bf16.mxu0 %v316_v3  ;;  %v324_v10 = vpack.c.bf16 %v125_v8, %v124_v7  ;;  %v328_v12 = vpack.c.bf16 %v127_v11, %v126_v9  ;;  %v128_v13 = vld [vmem:[%s454_s3 + $0x20] sm:$0xff]  ;;  %v129_v14 = vld [vmem:[%s454_s3 + $0x28] sm:$0xff]  ;;  %v130_v17 = vld [vmem:[%s454_s3 + $0x30] sm:$0xff] }
   0x5   :  { %319 = vmatpush3.bf16.msra.mxu0 %v316_v3  ;;  %v332_v15 = vpack.c.bf16 %v129_v14, %v128_v13  ;;  %v28_v16 = vld [vmem:[%s453_s0 + $0x8] sm:$0xff]  ;;  %v131_v18 = vld [vmem:[%s454_s3 + $0x38] sm:$0xff]  ;;  %v261_v20 = vld [vmem:[%s455_s2] ss:$0 sm:$0xff] }
   0x6   :  { %321 = vmatprep.subr.bf16.mxu0 %v320_v6  ;;  %325 = vmatprep.subr.bf16.mxu1 %v324_v10  ;;  %v336_v19 = vpack.c.bf16 %v131_v18, %v130_v17  ;;  %v264_v27 = vld [vmem:[%s456_s4] ss:$0 sm:$0xff] }
   0x7   :  { %327 = vmatpush3.bf16.msra.mxu1 %v324_v10  ;;  %v267_v32 = vld [vmem:[%s457_s5] ss:$0 sm:$0xff] }
   0x8   :  { %329 = vmatprep.subr.bf16.mxu1 %v328_v12 }
   0x9   :  { %323 = vmatpush3.bf16.msra.mxu0 %v320_v6 }
   0xb   :  { %331 = vmatpush3.bf16.msra.mxu1 %v328_v12 }
   0xc   :  { %295 = vmatmul.mubr.msk.f32.vlgmr.msra.gmra.mrb[0].mxu0 %vm40_vm0, %v28_v16  ;;  %333 = vmatprep.subr.bf16.mxu1 %v332_v15 }
   0xf   :  { %335 = vmatpush3.bf16.msra.mxu1 %v332_v15 }
  0x10   :  { %337 = vmatprep.subr.bf16.mxu1 %v336_v19 }
  0x13   :  { %339 = vmatpush3.bf16.msra.mxu1 %v336_v19 }
  0xdf   :  { %v296_v21 = vpop.f32.mrb[0].mxu0 }
  0xe0   :  { %v119_v22 = vadd.f32 %v296_v21, %v261_v20  ;;  %v113_v23 = vpop.f32.mrb[1].mxu0 }
  0xe1   :  { %v114_v24 = vadd.f32 %v261_v20, %v113_v23 }
  0xe2   :  { %v123_v26 = vmax.f32 %v119_v22, 0.0 }
  0xe3   :  { %v122_v25 = vmax.f32 %v114_v24, 0.0 }
  0xe5   :  { %313 = vmatprep.mubr.msk.f32.mxu1 %vm139_vm1, %v122_v25 }
  0xe6   :  { %314 = vmatmul.mubr.msk.f32.vlgmr.msra.gmra.mrb[0].mxu1 %vm139_vm1, %v123_v26 }
 0x1b9   :  { %v315_v28 = vpop.f32.mrb[0].mxu1 }
 0x1ba   :  { %v218_v29 = vadd.f32 %v315_v28, %v264_v27  ;;  %v212_v30 = vpop.f32.mrb[1].mxu1 }
 0x1bb   :  { %v213_v31 = vadd.f32 %v264_v27, %v212_v30 }
 0x1bc   :  { %v222_v33 = vmax.f32 %v218_v29, 0.0 }
 0x1bd   :  { %v221_v34 = vmax.f32 %v213_v31, 0.0 }
 0x1be   :  { %v231_v37 = vmul.f32 %v267_v32, %v222_v33 }
 0x1bf   :  { %v230_v35 = vmul.f32 %v267_v32, %v221_v34 }
 0x1c0   :  { %v235_v38 = vsel %vm40_vm0, %v231_v37, 0.0 }
 0x1c1   :  { %v232_v36 = vsel %vm40_vm0, %v230_v35, 0.0 }
 0x1c2   :  { %233 = vadd.xlane.f32.xlu0 %v232_v36 }
 0x1c6   :  { %236 = vadd.xlane.f32.xlu0 %v235_v38 }
 0x24f   :  { %v234_v40 = vpop.xlane.xlu0 %233 }
 0x250   :  { %v240_v41 = vadd.f32 %v239_v39, %v234_v40 }
 0x252   :  { %v268_v42 = vmul.f32 -1.442695, %v240_v41 }
 0x253   :  { %v237_v43 = vpop.xlane.xlu0 %236 }
 0x254   :  { %340 = vpow2.f32 %v268_v42  ;;  %v241_v44 = vadd.f32 %v239_v39, %v237_v43 }
 0x256   :  { %v269_v45 = vmul.f32 -1.442695, %v241_v44 }
 0x258   :  { %342 = vpow2.f32 %v269_v45 }
 0x25e   :  { %v341_v46 = vpop.eup %340 }
 0x25f   :  { %v248_v47 = vadd.f32 1.0, %v341_v46 }
 0x261   :  { %344 = vrcp.f32 %v248_v47 }
 0x262   :  { %v343_v48 = vpop.eup %342 }
 0x263   :  { %v249_v49 = vadd.f32 1.0, %v343_v48 }
 0x265   :  { %346 = vrcp.f32 %v249_v49 }
 0x26b   :  { %v345_v50 = vpop.eup %344 }
 0x26c   :  { %255 = vst.msk [vmem:[%s459_s7] sm:$0xff] %vm254_vm2, %v345_v50 }
 0x26f   :  { %v347_v51 = vpop.eup %346 }
 0x270   :  { %256 = vst.msk [vmem:[%s459_s7 + $0x8] sm:$0xff] %vm254_vm2, %v347_v51 }

</bundles_post_ra>
